<compile_context>
chip_gen: v5e
topology: v5e:2x2
jax: 0.10.0
libtpu: 0.0.40
codegen_flags: <defaults>
</compile_context>

<pallas_src>
import jax
import jax.numpy as jnp
from jax import lax
from jax.experimental import pallas as pl
from jax.experimental.pallas import tpu as pltpu

# ---- module hyperparameters (consistent with the PyTorch __init__) ----
DIM = 32            # dim
HEADS = 4           # heads
DIM_HEAD = 16       # dim_head
INNER = HEADS * DIM_HEAD          # inner_dim = 64
SCALE = DIM_HEAD ** (-0.5)
LN_EPS = 1e-5
# dropout = 0.0 -> identity at inference; project_out is True since heads != 1.


def _make_attention_kernel(block_b: int, n: int):
    """One grid step processes `block_b` batch elements (block_b * n rows)."""
    rows = block_b * n

    def kernel(x_ref, wqkv_ref, bqkv_ref, wout_ref, bout_ref, o_ref):
        x = x_ref[...]                                             # (rows, DIM) f32

        # ---- LayerNorm; gamma/beta are folded into wqkv/bqkv by the wrapper ----
        mean = jnp.mean(x, axis=-1, keepdims=True)
        cent = x - mean
        var = jnp.mean(cent * cent, axis=-1, keepdims=True)
        xn = cent * lax.rsqrt(var + LN_EPS)

        # ---- fused QKV projection: one (rows,32)x(32,192) MXU matmul ----
        qkv = jnp.dot(xn, wqkv_ref[...], preferred_element_type=jnp.float32)
        qkv = qkv + bqkv_ref[...]                                  # (rows, 3*INNER)

        # (rows, 3*INNER) -> (block_b, n, 3*INNER): splits the leading (sublane)
        # dim only, so it is layout-preserving when n % 8 == 0.
        qkv3 = qkv.reshape(block_b, n, 3 * INNER)

        # ---- attention: batch dim stays batched; only the 4-head loop unrolls ----
        head_outs = []
        for h in range(HEADS):
            c = h * DIM_HEAD
            q = qkv3[:, :, c:c + DIM_HEAD]                           # (b, n, dh)
            k = qkv3[:, :, INNER + c:INNER + c + DIM_HEAD]           # (b, n, dh)
            v = qkv3[:, :, 2 * INNER + c:2 * INNER + c + DIM_HEAD]   # (b, n, dh)

            # softmax scale is already folded into the q columns of wqkv.
            s = jnp.einsum('bqd,bkd->bqk', q, k,
                           preferred_element_type=jnp.float32)       # (b, n, n)
            m = jnp.max(s, axis=-1, keepdims=True)
            e = jnp.exp(s - m)
            attn = e / jnp.sum(e, axis=-1, keepdims=True)            # exact softmax
            head_outs.append(jnp.einsum('bqk,bkd->bqd', attn, v,
                                        preferred_element_type=jnp.float32))

        # 'b h n d -> (b n) (h d)': single lane concat + leading-dim collapse.
        out = jnp.concatenate(head_outs, axis=-1).reshape(rows, INNER)

        # ---- output projection (+ bias); Dropout(p=0) is identity ----
        y = jnp.dot(out, wout_ref[...], preferred_element_type=jnp.float32)
        y = y + bout_ref[...]
        o_ref[...] = y.astype(o_ref.dtype)

    return kernel


def _pick_block_b(batch: int, n: int, target_rows: int = 1024) -> int:
    """Largest divisor of `batch` with <= target_rows rows per grid step,
    preferring >= 2 grid steps (v7x has 2 TensorCores) when each step would
    still carry a few hundred rows of work. Never asserts on awkward batches."""
    cap = max(1, target_rows // max(n, 1))
    divisors = [d for d in range(1, batch + 1) if batch % d == 0]
    cands = [d for d in divisors if d <= cap]
    bb = max(cands) if cands else 1
    if batch // bb < 2:
        two_step = [d for d in cands if batch // d >= 2 and d * n >= 256]
        if two_step:
            bb = max(two_step)
    return bb


def attention_forward(x, gamma, beta, w_qkv, w_out, b_out, block_b=None):
    B, N, D = x.shape
    assert D == DIM and w_qkv.shape == (DIM, 3 * INNER) and w_out.shape == (INNER, DIM)

    if block_b is None:
        block_b = _pick_block_b(B, N)
    assert B % block_b == 0

    # Fold LayerNorm affine + softmax scale into the QKV weights/bias.
    # Runs once in XLA at zero kernel cost.
    col_scale = jnp.concatenate([
        jnp.full((INNER,), SCALE, dtype=w_qkv.dtype),      # q columns get *scale
        jnp.ones((2 * INNER,), dtype=w_qkv.dtype),         # k, v columns untouched
    ])
    w_qkv_eff = (gamma[:, None] * w_qkv) * col_scale[None, :]          # (D, 3*INNER)
    b_qkv_eff = ((beta @ w_qkv) * col_scale).reshape(1, 3 * INNER)     # (1, 3*INNER)
    b_out2 = b_out.reshape(1, D)

    x2 = x.reshape(B * N, D)        # plain 2-D rows; no lane-crossing reshape in-kernel
    rows = block_b * N

    y2 = pl.pallas_call(
        _make_attention_kernel(block_b, N),
        out_shape=jax.ShapeDtypeStruct((B * N, D), x.dtype),
        grid_spec=pltpu.PrefetchScalarGridSpec(
            num_scalar_prefetch=0,
            grid=(B // block_b,),
            in_specs=[
                pl.BlockSpec((rows, D), lambda i: (i, 0)),            # x rows
                pl.BlockSpec((D, 3 * INNER), lambda i: (0, 0)),       # folded W_qkv (resident)
                pl.BlockSpec((1, 3 * INNER), lambda i: (0, 0)),       # folded b_qkv (resident)
                pl.BlockSpec((INNER, D), lambda i: (0, 0)),           # W_out (resident)
                pl.BlockSpec((1, D), lambda i: (0, 0)),               # b_out (resident)
            ],
            out_specs=pl.BlockSpec((rows, D), lambda i: (i, 0)),
        ),
        compiler_params=pltpu.CompilerParams(
            dimension_semantics=("parallel",)),
    )(x2, w_qkv_eff, b_qkv_eff, w_out, b_out2)

    return y2.reshape(B, N, D)


def reference_forward(x, gamma, beta, w_qkv, w_out, b_out, precision=None):
    # Pure-JAX reference mirroring the PyTorch module.
    mean = jnp.mean(x, axis=-1, keepdims=True)
    var = jnp.mean((x - mean) ** 2, axis=-1, keepdims=True)
    xn = (x - mean) / jnp.sqrt(var + LN_EPS) * gamma + beta
    qkv = jnp.einsum('bnd,df->bnf', xn, w_qkv, precision=precision)
    q, k, v = jnp.split(qkv, 3, axis=-1)

    def split_heads(t):
        B, N, _ = t.shape
        return t.reshape(B, N, HEADS, DIM_HEAD).transpose(0, 2, 1, 3)

    q, k, v = map(split_heads, (q, k, v))
    dots = jnp.einsum('bhnd,bhmd->bhnm', q, k, precision=precision) * SCALE
    attn = jax.nn.softmax(dots, axis=-1)
    out = jnp.einsum('bhnm,bhmd->bhnd', attn, v, precision=precision)
    B, H, N, d = out.shape
    out = out.transpose(0, 2, 1, 3).reshape(B, N, H * d)
    return jnp.einsum('bnf,fd->bnd', out, w_out, precision=precision) + b_out


if __name__ == "__main__":
    B, N = 2, 8
    key = jax.random.PRNGKey(0)
    kx, kg, kb, kqkv, kwo, kbo = jax.random.split(key, 6)

    x = jax.random.normal(kx, (B, N, DIM), dtype=jnp.float32)

    # Deterministic synthetic parameters (non-trivial gamma/beta so the
    # LayerNorm-folding path is actually exercised).
    gamma = 1.0 + 0.1 * jax.random.normal(kg, (DIM,), dtype=jnp.float32)
    beta = 0.1 * jax.random.normal(kb, (DIM,), dtype=jnp.float32)
    w_qkv = jax.random.normal(kqkv, (DIM, 3 * INNER), dtype=jnp.float32) * (DIM ** -0.5)
    w_out = jax.random.normal(kwo, (INNER, DIM), dtype=jnp.float32) * (INNER ** -0.5)
    b_out = jax.random.normal(kbo, (DIM,), dtype=jnp.float32) * 0.01

    y = attention_forward(x, gamma, beta, w_qkv, w_out, b_out)
    y = jax.block_until_ready(y)
    assert y.shape == x.shape

    # Gold reference at HIGHEST precision. Tolerance is calibrated against the
    # backend's default f32 matmul precision (MXU default path uses bf16-ish
    # operands), so the check stays tight on exact backends and robust on TPU.
    y_hp = reference_forward(x, gamma, beta, w_qkv, w_out, b_out,
                             precision=jax.lax.Precision.HIGHEST)
    y_def = reference_forward(x, gamma, beta, w_qkv, w_out, b_out, precision=None)
    prec_err = float(jnp.max(jnp.abs(y_hp - y_def)))
    tol = max(1e-3, 8.0 * prec_err)

    assert jnp.allclose(y, y_hp, atol=tol, rtol=tol), "mismatch vs reference"

    print("KERNEL_OK")
</pallas_src>

<mosaic_0001>
module attributes {stable_mosaic.version = 11 : i64} {
  func.func @kernel(%arg0: i32, %arg1: memref<16x32xf32, #tpu.memory_space<vmem>>, %arg2: memref<32x192xf32, #tpu.memory_space<vmem>>, %arg3: memref<1x192xf32, #tpu.memory_space<vmem>>, %arg4: memref<64x32xf32, #tpu.memory_space<vmem>>, %arg5: memref<1x32xf32, #tpu.memory_space<vmem>>, %arg6: memref<16x32xf32, #tpu.memory_space<vmem>>) attributes {dimension_semantics = [#tpu.dimension_semantics<parallel>], iteration_bounds = array<i64: 1>, scalar_prefetch = 0 : i64, scratch_operands = 0 : i64, tpu.core_type = #tpu.core_type<tc>, window_params = [{transform_indices = @transform_0, window_bounds = array<i64: 16, 32>}, {pipeline_mode = #tpu.pipeline_mode<synchronous>, transform_indices = @transform_1, window_bounds = array<i64: 32, 192>}, {pipeline_mode = #tpu.pipeline_mode<synchronous>, transform_indices = @transform_2, window_bounds = array<i64: 1, 192>}, {pipeline_mode = #tpu.pipeline_mode<synchronous>, transform_indices = @transform_3, window_bounds = array<i64: 64, 32>}, {pipeline_mode = #tpu.pipeline_mode<synchronous>, transform_indices = @transform_4, window_bounds = array<i64: 1, 32>}, {transform_indices = @transform_5, window_bounds = array<i64: 16, 32>}]} {
    %c0 = arith.constant 0 : index
    %c0_0 = arith.constant 0 : index
    %0 = vector.load %arg1[%c0, %c0_0] : memref<16x32xf32, #tpu.memory_space<vmem>>, vector<16x32xf32>
    %cst = arith.constant dense<0.000000e+00> : vector<16xf32>
    %1 = vector.multi_reduction <add>, %0, %cst [1] : vector<16x32xf32> to vector<16xf32>
    %2 = vector.shape_cast %1 : vector<16xf32> to vector<16x1xf32>
    %cst_1 = arith.constant 3.200000e+01 : f32
    %3 = vector.broadcast %cst_1 : f32 to vector<16x1xf32>
    %4 = arith.divf %2, %3 : vector<16x1xf32>
    %5 = vector.broadcast %4 : vector<16x1xf32> to vector<16x32xf32>
    %6 = arith.subf %0, %5 : vector<16x32xf32>
    %7 = arith.mulf %6, %6 : vector<16x32xf32>
    %cst_2 = arith.constant dense<0.000000e+00> : vector<16xf32>
    %8 = vector.multi_reduction <add>, %7, %cst_2 [1] : vector<16x32xf32> to vector<16xf32>
    %9 = vector.shape_cast %8 : vector<16xf32> to vector<16x1xf32>
    %cst_3 = arith.constant 3.200000e+01 : f32
    %10 = vector.broadcast %cst_3 : f32 to vector<16x1xf32>
    %11 = arith.divf %9, %10 : vector<16x1xf32>
    %cst_4 = arith.constant 9.99999974E-6 : f32
    %12 = vector.broadcast %cst_4 : f32 to vector<16x1xf32>
    %13 = arith.addf %11, %12 : vector<16x1xf32>
    %14 = math.rsqrt %13 : vector<16x1xf32>
    %15 = vector.broadcast %14 : vector<16x1xf32> to vector<16x32xf32>
    %16 = arith.mulf %6, %15 : vector<16x32xf32>
    %c0_5 = arith.constant 0 : index
    %c0_6 = arith.constant 0 : index
    %17 = vector.load %arg2[%c0_5, %c0_6] : memref<32x192xf32, #tpu.memory_space<vmem>>, vector<32x192xf32>
    %cst_7 = arith.constant dense<0.000000e+00> : vector<16x192xf32>
    %18 = tpu.matmul %16, %17, %cst_7 {dimension_numbers = #tpu.dot_dimension_numbers<[1], [0], [0], [1], [0, 0, 1, 1], [], []>} : vector<16x32xf32>, vector<32x192xf32>, vector<16x192xf32> -> vector<16x192xf32>
    %c0_8 = arith.constant 0 : index
    %c0_9 = arith.constant 0 : index
    %19 = vector.load %arg3[%c0_8, %c0_9] : memref<1x192xf32, #tpu.memory_space<vmem>>, vector<1x192xf32>
    %20 = vector.broadcast %19 : vector<1x192xf32> to vector<16x192xf32>
    %21 = arith.addf %18, %20 : vector<16x192xf32>
    %22 = vector.shape_cast %21 : vector<16x192xf32> to vector<2x8x192xf32>
    %23 = vector.extract_strided_slice %22 {offsets = [0, 0, 0], sizes = [2, 8, 16], strides = [1, 1, 1]} : vector<2x8x192xf32> to vector<2x8x16xf32>
    %24 = vector.extract_strided_slice %22 {offsets = [0, 0, 64], sizes = [2, 8, 16], strides = [1, 1, 1]} : vector<2x8x192xf32> to vector<2x8x16xf32>
    %25 = vector.extract_strided_slice %22 {offsets = [0, 0, 128], sizes = [2, 8, 16], strides = [1, 1, 1]} : vector<2x8x192xf32> to vector<2x8x16xf32>
    "tpu.trace_start"() <{level = 10 : i32, message = "bqd,bkd->bqk"}> : () -> ()
    %cst_10 = arith.constant dense<0.000000e+00> : vector<2x8x8xf32>
    %26 = tpu.matmul %23, %24, %cst_10 {dimension_numbers = #tpu.dot_dimension_numbers<[2], [2], [1], [1], [0, 0, 0, 1, 1, 1], [0], [0]>} : vector<2x8x16xf32>, vector<2x8x16xf32>, vector<2x8x8xf32> -> vector<2x8x8xf32>
    "tpu.trace_stop"() : () -> ()
    %cst_11 = arith.constant dense<0xFF800000> : vector<2x8xf32>
    %27 = vector.multi_reduction <maximumf>, %26, %cst_11 [2] : vector<2x8x8xf32> to vector<2x8xf32>
    %28 = vector.shape_cast %27 : vector<2x8xf32> to vector<2x8x1xf32>
    %29 = vector.broadcast %28 : vector<2x8x1xf32> to vector<2x8x8xf32>
    %30 = arith.subf %26, %29 : vector<2x8x8xf32>
    %31 = math.exp %30 : vector<2x8x8xf32>
    %cst_12 = arith.constant dense<0.000000e+00> : vector<2x8xf32>
    %32 = vector.multi_reduction <add>, %31, %cst_12 [2] : vector<2x8x8xf32> to vector<2x8xf32>
    %33 = vector.shape_cast %32 : vector<2x8xf32> to vector<2x8x1xf32>
    %34 = vector.broadcast %33 : vector<2x8x1xf32> to vector<2x8x8xf32>
    %35 = arith.divf %31, %34 : vector<2x8x8xf32>
    "tpu.trace_start"() <{level = 10 : i32, message = "bqk,bkd->bqd"}> : () -> ()
    %cst_13 = arith.constant dense<0.000000e+00> : vector<2x8x16xf32>
    %36 = tpu.matmul %35, %25, %cst_13 {dimension_numbers = #tpu.dot_dimension_numbers<[2], [1], [1], [2], [0, 0, 0, 1, 1, 2], [0], [0]>} : vector<2x8x8xf32>, vector<2x8x16xf32>, vector<2x8x16xf32> -> vector<2x8x16xf32>
    "tpu.trace_stop"() : () -> ()
    %37 = vector.extract_strided_slice %22 {offsets = [0, 0, 16], sizes = [2, 8, 16], strides = [1, 1, 1]} : vector<2x8x192xf32> to vector<2x8x16xf32>
    %38 = vector.extract_strided_slice %22 {offsets = [0, 0, 80], sizes = [2, 8, 16], strides = [1, 1, 1]} : vector<2x8x192xf32> to vector<2x8x16xf32>
    %39 = vector.extract_strided_slice %22 {offsets = [0, 0, 144], sizes = [2, 8, 16], strides = [1, 1, 1]} : vector<2x8x192xf32> to vector<2x8x16xf32>
    "tpu.trace_start"() <{level = 10 : i32, message = "bqd,bkd->bqk"}> : () -> ()
    %cst_14 = arith.constant dense<0.000000e+00> : vector<2x8x8xf32>
    %40 = tpu.matmul %37, %38, %cst_14 {dimension_numbers = #tpu.dot_dimension_numbers<[2], [2], [1], [1], [0, 0, 0, 1, 1, 1], [0], [0]>} : vector<2x8x16xf32>, vector<2x8x16xf32>, vector<2x8x8xf32> -> vector<2x8x8xf32>
    "tpu.trace_stop"() : () -> ()
    %cst_15 = arith.constant dense<0xFF800000> : vector<2x8xf32>
    %41 = vector.multi_reduction <maximumf>, %40, %cst_15 [2] : vector<2x8x8xf32> to vector<2x8xf32>
    %42 = vector.shape_cast %41 : vector<2x8xf32> to vector<2x8x1xf32>
    %43 = vector.broadcast %42 : vector<2x8x1xf32> to vector<2x8x8xf32>
    %44 = arith.subf %40, %43 : vector<2x8x8xf32>
    %45 = math.exp %44 : vector<2x8x8xf32>
    %cst_16 = arith.constant dense<0.000000e+00> : vector<2x8xf32>
    %46 = vector.multi_reduction <add>, %45, %cst_16 [2] : vector<2x8x8xf32> to vector<2x8xf32>
    %47 = vector.shape_cast %46 : vector<2x8xf32> to vector<2x8x1xf32>
    %48 = vector.broadcast %47 : vector<2x8x1xf32> to vector<2x8x8xf32>
    %49 = arith.divf %45, %48 : vector<2x8x8xf32>
    "tpu.trace_start"() <{level = 10 : i32, message = "bqk,bkd->bqd"}> : () -> ()
    %cst_17 = arith.constant dense<0.000000e+00> : vector<2x8x16xf32>
    %50 = tpu.matmul %49, %39, %cst_17 {dimension_numbers = #tpu.dot_dimension_numbers<[2], [1], [1], [2], [0, 0, 0, 1, 1, 2], [0], [0]>} : vector<2x8x8xf32>, vector<2x8x16xf32>, vector<2x8x16xf32> -> vector<2x8x16xf32>
    "tpu.trace_stop"() : () -> ()
    %51 = vector.extract_strided_slice %22 {offsets = [0, 0, 32], sizes = [2, 8, 16], strides = [1, 1, 1]} : vector<2x8x192xf32> to vector<2x8x16xf32>
    %52 = vector.extract_strided_slice %22 {offsets = [0, 0, 96], sizes = [2, 8, 16], strides = [1, 1, 1]} : vector<2x8x192xf32> to vector<2x8x16xf32>
    %53 = vector.extract_strided_slice %22 {offsets = [0, 0, 160], sizes = [2, 8, 16], strides = [1, 1, 1]} : vector<2x8x192xf32> to vector<2x8x16xf32>
    "tpu.trace_start"() <{level = 10 : i32, message = "bqd,bkd->bqk"}> : () -> ()
    %cst_18 = arith.constant dense<0.000000e+00> : vector<2x8x8xf32>
    %54 = tpu.matmul %51, %52, %cst_18 {dimension_numbers = #tpu.dot_dimension_numbers<[2], [2], [1], [1], [0, 0, 0, 1, 1, 1], [0], [0]>} : vector<2x8x16xf32>, vector<2x8x16xf32>, vector<2x8x8xf32> -> vector<2x8x8xf32>
    "tpu.trace_stop"() : () -> ()
    %cst_19 = arith.constant dense<0xFF800000> : vector<2x8xf32>
    %55 = vector.multi_reduction <maximumf>, %54, %cst_19 [2] : vector<2x8x8xf32> to vector<2x8xf32>
    %56 = vector.shape_cast %55 : vector<2x8xf32> to vector<2x8x1xf32>
    %57 = vector.broadcast %56 : vector<2x8x1xf32> to vector<2x8x8xf32>
    %58 = arith.subf %54, %57 : vector<2x8x8xf32>
    %59 = math.exp %58 : vector<2x8x8xf32>
    %cst_20 = arith.constant dense<0.000000e+00> : vector<2x8xf32>
    %60 = vector.multi_reduction <add>, %59, %cst_20 [2] : vector<2x8x8xf32> to vector<2x8xf32>
    %61 = vector.shape_cast %60 : vector<2x8xf32> to vector<2x8x1xf32>
    %62 = vector.broadcast %61 : vector<2x8x1xf32> to vector<2x8x8xf32>
    %63 = arith.divf %59, %62 : vector<2x8x8xf32>
    "tpu.trace_start"() <{level = 10 : i32, message = "bqk,bkd->bqd"}> : () -> ()
    %cst_21 = arith.constant dense<0.000000e+00> : vector<2x8x16xf32>
    %64 = tpu.matmul %63, %53, %cst_21 {dimension_numbers = #tpu.dot_dimension_numbers<[2], [1], [1], [2], [0, 0, 0, 1, 1, 2], [0], [0]>} : vector<2x8x8xf32>, vector<2x8x16xf32>, vector<2x8x16xf32> -> vector<2x8x16xf32>
    "tpu.trace_stop"() : () -> ()
    %65 = vector.extract_strided_slice %22 {offsets = [0, 0, 48], sizes = [2, 8, 16], strides = [1, 1, 1]} : vector<2x8x192xf32> to vector<2x8x16xf32>
    %66 = vector.extract_strided_slice %22 {offsets = [0, 0, 112], sizes = [2, 8, 16], strides = [1, 1, 1]} : vector<2x8x192xf32> to vector<2x8x16xf32>
    %67 = vector.extract_strided_slice %22 {offsets = [0, 0, 176], sizes = [2, 8, 16], strides = [1, 1, 1]} : vector<2x8x192xf32> to vector<2x8x16xf32>
    "tpu.trace_start"() <{level = 10 : i32, message = "bqd,bkd->bqk"}> : () -> ()
    %cst_22 = arith.constant dense<0.000000e+00> : vector<2x8x8xf32>
    %68 = tpu.matmul %65, %66, %cst_22 {dimension_numbers = #tpu.dot_dimension_numbers<[2], [2], [1], [1], [0, 0, 0, 1, 1, 1], [0], [0]>} : vector<2x8x16xf32>, vector<2x8x16xf32>, vector<2x8x8xf32> -> vector<2x8x8xf32>
    "tpu.trace_stop"() : () -> ()
    %cst_23 = arith.constant dense<0xFF800000> : vector<2x8xf32>
    %69 = vector.multi_reduction <maximumf>, %68, %cst_23 [2] : vector<2x8x8xf32> to vector<2x8xf32>
    %70 = vector.shape_cast %69 : vector<2x8xf32> to vector<2x8x1xf32>
    %71 = vector.broadcast %70 : vector<2x8x1xf32> to vector<2x8x8xf32>
    %72 = arith.subf %68, %71 : vector<2x8x8xf32>
    %73 = math.exp %72 : vector<2x8x8xf32>
    %cst_24 = arith.constant dense<0.000000e+00> : vector<2x8xf32>
    %74 = vector.multi_reduction <add>, %73, %cst_24 [2] : vector<2x8x8xf32> to vector<2x8xf32>
    %75 = vector.shape_cast %74 : vector<2x8xf32> to vector<2x8x1xf32>
    %76 = vector.broadcast %75 : vector<2x8x1xf32> to vector<2x8x8xf32>
    %77 = arith.divf %73, %76 : vector<2x8x8xf32>
    "tpu.trace_start"() <{level = 10 : i32, message = "bqk,bkd->bqd"}> : () -> ()
    %cst_25 = arith.constant dense<0.000000e+00> : vector<2x8x16xf32>
    %78 = tpu.matmul %77, %67, %cst_25 {dimension_numbers = #tpu.dot_dimension_numbers<[2], [1], [1], [2], [0, 0, 0, 1, 1, 2], [0], [0]>} : vector<2x8x8xf32>, vector<2x8x16xf32>, vector<2x8x16xf32> -> vector<2x8x16xf32>
    "tpu.trace_stop"() : () -> ()
    %79 = tpu.concatenate %36, %50, %64, %78 in 2 : vector<2x8x16xf32>, vector<2x8x16xf32>, vector<2x8x16xf32>, vector<2x8x16xf32> -> vector<2x8x64xf32>
    %80 = vector.shape_cast %79 : vector<2x8x64xf32> to vector<16x64xf32>
    %c0_26 = arith.constant 0 : index
    %c0_27 = arith.constant 0 : index
    %81 = vector.load %arg4[%c0_26, %c0_27] : memref<64x32xf32, #tpu.memory_space<vmem>>, vector<64x32xf32>
    %cst_28 = arith.constant dense<0.000000e+00> : vector<16x32xf32>
    %82 = tpu.matmul %80, %81, %cst_28 {dimension_numbers = #tpu.dot_dimension_numbers<[1], [0], [0], [1], [0, 0, 1, 1], [], []>} : vector<16x64xf32>, vector<64x32xf32>, vector<16x32xf32> -> vector<16x32xf32>
    %c0_29 = arith.constant 0 : index
    %c0_30 = arith.constant 0 : index
    %83 = vector.load %arg5[%c0_29, %c0_30] : memref<1x32xf32, #tpu.memory_space<vmem>>, vector<1x32xf32>
    %84 = vector.broadcast %83 : vector<1x32xf32> to vector<16x32xf32>
    %85 = arith.addf %82, %84 : vector<16x32xf32>
    %c0_31 = arith.constant 0 : index
    %c0_32 = arith.constant 0 : index
    %86 = vector.load %arg6[%c0_31, %c0_32] : memref<16x32xf32, #tpu.memory_space<vmem>>, vector<16x32xf32>
    tpu.vector_store %arg6[%c0_31, %c0_32], %85 {strides = array<i32>} : memref<16x32xf32, #tpu.memory_space<vmem>>, vector<16x32xf32>,
    return
  }
  func.func @transform_0(%arg0: i32) -> (i32, i32) {
    %c0_i32 = arith.constant 0 : i32
    %c0_i32_0 = arith.constant 0 : i32
    return %arg0, %c0_i32 : i32, i32
  }
  func.func @transform_1(%arg0: i32) -> (i32, i32) {
    %c0_i32 = arith.constant 0 : i32
    %c0_i32_0 = arith.constant 0 : i32
    %c0_i32_1 = arith.constant 0 : i32
    return %c0_i32, %c0_i32_0 : i32, i32
  }
  func.func @transform_2(%arg0: i32) -> (i32, i32) {
    %c0_i32 = arith.constant 0 : i32
    %c0_i32_0 = arith.constant 0 : i32
    %c0_i32_1 = arith.constant 0 : i32
    return %c0_i32, %c0_i32_0 : i32, i32
  }
  func.func @transform_3(%arg0: i32) -> (i32, i32) {
    %c0_i32 = arith.constant 0 : i32
    %c0_i32_0 = arith.constant 0 : i32
    %c0_i32_1 = arith.constant 0 : i32
    return %c0_i32, %c0_i32_0 : i32, i32
  }
  func.func @transform_4(%arg0: i32) -> (i32, i32) {
    %c0_i32 = arith.constant 0 : i32
    %c0_i32_0 = arith.constant 0 : i32
    %c0_i32_1 = arith.constant 0 : i32
    return %c0_i32, %c0_i32_0 : i32, i32
  }
  func.func @transform_5(%arg0: i32) -> (i32, i32) {
    %c0_i32 = arith.constant 0 : i32
    %c0_i32_0 = arith.constant 0 : i32
    return %arg0, %c0_i32 : i32, i32
  }
}

</mosaic_0001>

<bundles_post_ra>
// kernel: tpu_custom_call.1
= control target key start
LH: loop header
LB: loop body
LE: loop exit
PB: predicated region body
PF: predicated region fallthrough
CT: control target
= control target key end

     0   :  { %vm23_vm0 = vcmask 261120   ;;  %s1212_s0 = inlined_call_operand.vmem [shape: f32[16,32], index: 0, kind: input, shape index: {}]   ;;  %s1213_s1 = inlined_call_operand.vmem [shape: f32[32,192], index: 1, kind: input, shape index: {}]   ;;  %s1214_s2 = inlined_call_operand.vmem [shape: f32[1,192], index: 2, kind: input, shape index: {}]   ;;  %s1215_s3 = inlined_call_operand.vmem [shape: f32[64,32], index: 3, kind: input, shape index: {}]   ;;  %s1216_s4 = inlined_call_operand.vmem [shape: f32[1,32], index: 4, kind: input, shape index: {}]   ;;  %s1217_s5 = inlined_call_operand.hbm [shape: f32[16,32], index: 5, kind: output, shape index: {}]  }
   0x1   :  { %v21_v0 = vld [vmem:[%s1212_s0] sm:$0xff] }
   0x2   :  { %v24_v1 = vsel %vm23_vm0, %v21_v0, 0.0 }
   0x3   :  { %10 = vsyncpa [#allocation3], 0  ;;  %25 = vadd.xlane.f32.xlu0 %v24_v1  ;;  %v22_v2 = vld [vmem:[%s1212_s0 + $0x8] sm:$0xff]  ;;  %v965_v4 = vmov 32.0   ;;  %v81_v21 = vld [vmem:[%s1213_s1 + $0x30] sm:$0xff]  ;;  %s966_s13 = smov 64  }
   0x4   :  { %v27_v3 = vsel %vm23_vm0, %v22_v2, 0.0  ;;  %901 = vrcp.f32 %v965_v4  ;;  %v82_v22 = vld [vmem:[%s1213_s1 + $0x38] sm:$0xff]  ;;  %107 = vmatpush.msra.mxu0 %v81_v21  ;;  %v79_v23 = vld [vmem:[%s1213_s1 + $0x20] sm:$0xff]  ;;  %v80_v24 = vld [vmem:[%s1213_s1 + $0x28] sm:$0xff]  ;;  %s967_s14 = smov 48   ;;  %s969_s15 = smov 112  }
   0x5   :  { %130 = vmatpush.msra.mxu1 %v82_v22  ;;  %v77_v25 = vld [vmem:[%s1213_s1 + $0x10] sm:$0xff]  ;;  %v78_v26 = vld [vmem:[%s1213_s1 + $0x18] sm:$0xff]  ;;  %v75_v27 = vld [vmem:[%s1213_s1] sm:$0xff]  ;;  %s970_s16 = smov 96   ;;  %s971_s17 = smov 16   ;;  %vm144_vm8 = vcmask 130048  }
   0x6   :  { %108 = vmatpush.msra.mxu0 %v79_v23  ;;  %v76_v28 = vld [vmem:[%s1213_s1 + $0x8] sm:$0xff]  ;;  %v83_v51 = vld [vmem:[%s1214_s2] sm:$0x3]  ;;  %s968_s2 = smov 32   ;;  %vm196_vm9 = vcmask 64512   ;;  %s972_s18 = smov 80  }
   0x7   :  { %131 = vmatpush.msra.mxu1 %v80_v24  ;;  %v85_v52 = vperm.slane %v83_v51, 0  ;;  %v86_v53 = vperm.slane %v83_v51, 1  ;;  %s973_s10 = smov [#allocation2]  }
   0x8   :  { %109 = vmatpush.msra.mxu0 %v77_v25  ;;  %s840_s11 = sshll.u32 %s973_s10, 4  ;;  %s841_s11 = int_to_ptr.vmem [resolvable:$true] %s840_s11 }
   0x9   :  { %132 = vmatpush.msra.mxu1 %v78_v26 }
   0xa   :  { %v902_v5 = vpop.eup %901  ;;  %110 = vmatpush.msra.mxu0 %v75_v27 }
   0xb   :  { %28 = vadd.xlane.f32.xlu0 %v27_v3  ;;  %v31_v6 = vmul.f32 32.0, %v902_v5  ;;  %vm35_vm1 = vweird.f32 %v902_v5  ;;  %133 = vmatpush.msra.mxu1 %v76_v28 }
   0xd   :  { %v32_v7 = vsub.f32 1.0, %v31_v6 }
   0xf   :  { %v33_v8 = vmul.f32 %v902_v5, %v32_v7 }
  0x11   :  { %v34_v9 = vadd.f32 %v902_v5, %v33_v8 }
  0x13   :  { %v36_v10 = vsel %vm35_vm1, %v902_v5, %v34_v9 }
  0x76   :  { %v26_v11 = vpop.xlane.xlu0 %25 }
  0x77   :  { %v37_v12 = vmul.f32 %v36_v10, %v26_v11 }
  0x79   :  { %v39_v13 = vsub.f32 %v21_v0, %v37_v12 }
  0x7b   :  { %v41_v14 = vmul.f32 %v39_v13, %v39_v13 }
  0x7d   :  { %v43_v15 = vsel %vm23_vm0, %v41_v14, 0.0 }
  0x7e   :  { %44 = vadd.xlane.f32.xlu1 %v43_v15  ;;  %v29_v16 = vpop.xlane.xlu0 %28 }
  0x7f   :  { %v38_v17 = vmul.f32 %v36_v10, %v29_v16 }
  0x81   :  { %v40_v18 = vsub.f32 %v22_v2, %v38_v17 }
  0x83   :  { %v42_v19 = vmul.f32 %v40_v18, %v40_v18 }
  0x85   :  { %v46_v20 = vsel %vm23_vm0, %v42_v19, 0.0 }
  0x86   :  { %47 = vadd.xlane.f32.xlu1 %v46_v20 }
  0xf1   :  { %v45_v29 = vpop.xlane.xlu1 %44 }
  0xf2   :  { %v49_v30 = vmul.f32 %v45_v29, %v36_v10 }
  0xf4   :  { %v51_v31 = vadd.f32 1e-05, %v49_v30 }
  0xf6   :  { %903 = vrsqrt.f32 %v51_v31  ;;  %vm59_vm3 = vweird.f32 %v51_v31 }
  0xf9   :  { %v48_v32 = vpop.xlane.xlu1 %47 }
  0xfa   :  { %v50_v33 = vmul.f32 %v48_v32, %v36_v10 }
  0xfc   :  { %v904_v34 = vpop.eup %903  ;;  %v52_v35 = vadd.f32 1e-05, %v50_v33 }
  0xfd   :  { %v54_v36 = vmul.f32 %v904_v34, %v51_v31  ;;  %vm60_vm2 = vweird.f32 %v904_v34 }
  0xfe   :  { %905 = vrsqrt.f32 %v52_v35  ;;  %vm61_vm4 = vmor %vm59_vm3, %vm60_vm2  ;;  %vm69_vm6 = vweird.f32 %v52_v35 }
  0xff   :  { %v55_v37 = vmul.f32 %v904_v34, %v54_v36 }
 0x101   :  { %v56_v38 = vmul.f32 0.5, %v55_v37 }
 0x103   :  { %v57_v39 = vsub.f32 1.5, %v56_v38 }
 0x104   :  { %v906_v40 = vpop.eup %905 }
 0x105   :  { %v64_v41 = vmul.f32 %v906_v40, %v52_v35  ;;  %v58_v42 = vmul.f32 %v904_v34, %v57_v39  ;;  %vm70_vm5 = vweird.f32 %v906_v40 }
 0x106   :  { %vm71_vm7 = vmor %vm69_vm6, %vm70_vm5 }
 0x107   :  { %v65_v43 = vmul.f32 %v906_v40, %v64_v41  ;;  %v62_v44 = vsel %vm61_vm4, %v904_v34, %v58_v42 }
 0x108   :  { %v73_v45 = vmul.f32 %v62_v44, %v39_v13 }
 0x109   :  { %v66_v46 = vmul.f32 0.5, %v65_v43 }
 0x10a   :  { %854 = vmatmul.msk.f32.vlgmr.msra.gmra.mxu0 %vm23_vm0, %v73_v45  ;;  %856 = vmatmul.msk.f32.vlgmr.msra.gmra.mxu1 %vm23_vm0, %v73_v45 }
 0x10b   :  { %v67_v47 = vsub.f32 1.5, %v66_v46 }
 0x10d   :  { %v68_v48 = vmul.f32 %v906_v40, %v67_v47 }
 0x10f   :  { %v72_v49 = vsel %vm71_vm7, %v906_v40, %v68_v48 }
 0x110   :  { %v74_v50 = vmul.f32 %v72_v49, %v40_v18 }
 0x112   :  { %855 = vmatmul.msk.f32.gmra.mxu0 %vm23_vm0, %v74_v50  ;;  %857 = vmatmul.msk.f32.gmra.mxu1 %vm23_vm0, %v74_v50 }
 0x187   :  { %v112_v54 = vpop.f32.mrf.mxu0  ;;  %v135_v55 = vpop.f32.mrf.mxu1 }
 0x188   :  { %v113_v56 = vadd.f32 %v112_v54, %v85_v52  ;;  %v1047_v57 = vadd.f32 %v135_v55, %v86_v53 }
 0x18a   :  { %263 = vmatpush.msrb.mxu0 %v1047_v57  ;;  %142 = vrot.lane.b32.xlu2 %v113_v56, %s966_s13 }
 0x18f   :  { %v115_v58 = vpop.f32.mrf.mxu0  ;;  %v138_v61 = vpop.f32.mrf.mxu1 }
 0x190   :  { %v116_v59 = vadd.f32 %v115_v58, %v85_v52  ;;  %v1059_v62 = vadd.f32 %v138_v61, %v86_v53 }
 0x192   :  { %321 = vrot.lane.b32.xlu1 %v116_v59, %s967_s14  ;;  %170 = vrot.lane.b32.xlu2 %v116_v59, %s966_s13  ;;  %s974_s13 = smov 128  }
 0x19a   :  { %293 = vrot.lane.b32.xlu2 %v113_v56, %s967_s14 }
 0x1a2   :  { %451 = vrot.lane.b32.xlu2 %v113_v56, %s968_s2 }
 0x1aa   :  { %319 = vrot.lane.b32.xlu2 %v116_v59, %s969_s15 }
 0x1b2   :  { %449 = vrot.lane.b32.xlu2 %v113_v56, %s970_s16 }
 0x1ba   :  { %607 = vrot.lane.b32.xlu2 %v113_v56, %s971_s17 }
 0x1c2   :  { %635 = vrot.lane.b32.xlu2 %v116_v59, %s971_s17 }
 0x1e4   :  { %v143_v60 = vpop.permute.xlu2 %142 }
 0x1e5   :  { %858 = vmatpush.xpose.msk.msra.mxu3 %vm144_vm8, %v143_v60  ;;  %v895_v60 = vpack.i.bf16 %v1059_v62, %v1047_v57 }
 0x1e8   :  { %859 = vmatmul.msk.f32.vlgmr.msra.gmra.mxu3 %vm144_vm8, %v113_v56 }
 0x1ec   :  { %v171_v63 = vpop.permute.xlu2 %170 }
 0x1ed   :  { %860 = vmatpush.xpose.msk.msrb.mxu3 %vm144_vm8, %v171_v63 }
 0x1f0   :  { %861 = vmatmul.msk.f32.vlgmr.msrb.gmra.mxu3 %vm144_vm8, %v116_v59 }
 0x1f1   :  { %286 = vmatpush.msra.mxu3 %v1059_v62 }
 0x1f4   :  { %v294_v0 = vpop.permute.xlu2 %293 }
 0x1f5   :  { %864 = vmatpush.xpose.msk.msra.mxu2 %vm144_vm8, %v294_v0 }
 0x1fc   :  { %v452_v1 = vpop.permute.xlu2 %451 }
 0x1fd   :  { %870 = vmatpush.xpose.msk.msrb.mxu2 %vm144_vm8, %v452_v1 }
 0x204   :  { %v322_v2 = vpop.permute.xlu1 %321  ;;  %v320_v7 = vpop.permute.xlu2 %319 }
 0x205   :  { %866 = vmatpush.xpose.msk.msrb.mxu3 %vm144_vm8, %v322_v2 }
 0x20c   :  { %v450_v11 = vpop.permute.xlu2 %449 }
 0x214   :  { %v608_v15 = vpop.permute.xlu2 %607 }
 0x21c   :  { %v636_v32 = vpop.permute.xlu2 %635 }
 0x26b   :  { %v1067_v3 = vpop.f32.mrf.mxu3 }
 0x26c   :  { %v197_v6 = vsel %vm196_vm9, %v1067_v3, -inf }
 0x273   :  { %v193_v4 = vpop.f32.mrf.mxu3 }
 0x274   :  { %v200_v5 = vsel %vm196_vm9, %v193_v4, -inf }
 0x275   :  { %201 = vmax.xlane.f32.xlu0 %v200_v5 }
 0x289   :  { %291 = vrot.lane.b32.xlu0 %v113_v56, %s969_s15 }
 0x291   :  { %479 = vrot.lane.b32.xlu0 %v116_v59, %s968_s2 }
 0x299   :  { %605 = vrot.lane.b32.xlu0 %v113_v56, %s972_s18 }
 0x2c3   :  { %198 = vmax.xlane.f32.xlu0 %v197_v6 }
 0x2e8   :  { %v202_v8 = vpop.xlane.xlu0 %201 }
 0x2e9   :  { %v204_v9 = vsub.f32 %v193_v4, %v202_v8 }
 0x2eb   :  { %v207_v10 = vmul.f32 1.442695, %v204_v9 }
 0x2ed   :  { %907 = vpow2.f32 %v207_v10 }
 0x2f3   :  { %v908_v12 = vpop.eup %907 }
 0x2f4   :  { %v212_v13 = vsel %vm196_vm9, %v908_v12, 0.0 }
 0x2f5   :  { %213 = vadd.xlane.f32.xlu1 %v212_v13 }
 0x2fb   :  { %v292_v14 = vpop.permute.xlu0 %291 }
 0x2fc   :  { %865 = vmatmul.msk.f32.vlgmr.msra.gmra.mxu2 %vm144_vm8, %v292_v14 }
 0x2fd   :  { %876 = vmatpush.xpose.msk.msra.mxu2 %vm144_vm8, %v608_v15 }
 0x303   :  { %v480_v16 = vpop.permute.xlu0 %479 }
 0x304   :  { %871 = vmatmul.msk.f32.vlgmr.msrb.gmra.mxu2 %vm144_vm8, %v450_v11 }
 0x30b   :  { %v606_v17 = vpop.permute.xlu0 %605 }
 0x30c   :  { %877 = vmatmul.msk.f32.vlgmr.msra.gmra.mxu2 %vm144_vm8, %v606_v17 }
 0x30e   :  { %477 = vrot.lane.b32.xlu1 %v116_v59, %s970_s16 }
 0x316   :  { %633 = vrot.lane.b32.xlu1 %v116_v59, %s972_s18 }
 0x336   :  { %v199_v38 = vpop.xlane.xlu0 %198 }
 0x337   :  { %v203_v40 = vsub.f32 %v1067_v3, %v199_v38 }
 0x339   :  { %v205_v44 = vmul.f32 1.442695, %v203_v40 }
 0x368   :  { %v214_v18 = vpop.xlane.xlu1 %213 }
 0x369   :  { %909 = vrcp.f32 %v214_v18  ;;  %v241_v22 = vand.u32 2147483648, %v214_v18  ;;  %v239_v24 = vand.u32 2147483647, %v214_v18  ;;  %vm235_vm11 = vweird.f32 %v214_v18 }
 0x36a   :  { %911 = vpow2.f32 %v205_v44 }
 0x36b   :  { %v242_v26 = vor.u32 1.1754944e-38, %v241_v22  ;;  %vm240_vm13 = vcmp.eq.f32.partialorder %v239_v24, 8.507059e+37 }
 0x36f   :  { %v910_v19 = vpop.eup %909 }
 0x370   :  { %v231_v20 = vmul.f32 %v910_v19, %v214_v18  ;;  %vm236_vm10 = vweird.f32 %v910_v19  ;;  %v1099_v53 = vpop.eup %911 }
 0x371   :  { %vm237_vm12 = vmor %vm235_vm11, %vm236_vm10  ;;  %v209_v55 = vsel %vm196_vm9, %v1099_v53, 0.0 }
 0x372   :  { %v232_v21 = vsub.f32 1.0, %v231_v20 }
 0x374   :  { %v233_v23 = vmul.f32 %v910_v19, %v232_v21 }
 0x376   :  { %v234_v25 = vadd.f32 %v910_v19, %v233_v23 }
 0x378   :  { %v238_v27 = vsel %vm237_vm12, %v910_v19, %v234_v25 }
 0x379   :  { %v243_v28 = vsel %vm240_vm13, %v242_v26, %v238_v27 }
 0x37a   :  { %v244_v29 = vmul.f32 %v908_v12, %v243_v28 }
 0x37c   :  { %863 = vmatmul.msk.f32.vlgmr.msra.gmra.mxu3 %vm196_vm9, %v244_v29 }
 0x37d   :  { %872 = vmatpush.xpose.msk.msra.mxu3 %vm144_vm8, %v480_v16 }
 0x37f   :  { %v316_v30 = vpop.f32.mrf.mxu2 }
 0x380   :  { %v347_v31 = vsel %vm196_vm9, %v316_v30, -inf  ;;  %v478_v35 = vpop.permute.xlu1 %477 }
 0x381   :  { %348 = vmax.xlane.f32.xlu2 %v347_v31 }
 0x384   :  { %867 = vmatmul.msk.f32.vlgmr.msrb.gmra.mxu3 %vm144_vm8, %v320_v7 }
 0x385   :  { %878 = vmatpush.xpose.msk.msrb.mxu3 %vm144_vm8, %v636_v32 }
 0x387   :  { %v474_v33 = vpop.f32.mrf.mxu2 }
 0x388   :  { %v505_v34 = vsel %vm196_vm9, %v474_v33, -inf  ;;  %v634_v36 = vpop.permute.xlu1 %633 }
 0x389   :  { %506 = vmax.xlane.f32.xlu0 %v505_v34 }
 0x38c   :  { %873 = vmatmul.msk.f32.vlgmr.msra.gmra.mxu3 %vm144_vm8, %v478_v35 }
 0x38f   :  { %v630_v47 = vpop.f32.mrf.mxu2 }
 0x390   :  { %v661_v51 = vsel %vm196_vm9, %v630_v47, -inf }
 0x394   :  { %879 = vmatmul.msk.f32.vlgmr.msrb.gmra.mxu3 %vm144_vm8, %v634_v36 }
 0x3f4   :  { %v349_v39 = vpop.xlane.xlu2 %348 }
 0x3f5   :  { %v353_v41 = vsub.f32 %v316_v30, %v349_v39 }
 0x3f7   :  { %v355_v45 = vmul.f32 1.442695, %v353_v41 }
 0x3f9   :  { %913 = vpow2.f32 %v355_v45 }
 0x3fc   :  { %v507_v46 = vpop.xlane.xlu0 %506 }
 0x3fd   :  { %v511_v48 = vsub.f32 %v474_v33, %v507_v46 }
 0x3ff   :  { %v1090_v37 = vpop.f32.mrf.mxu3  ;;  %v513_v52 = vmul.f32 1.442695, %v511_v48  ;;  %v1101_v54 = vpop.eup %913 }
 0x400   :  { %v359_v56 = vsel %vm196_vm9, %v1101_v54, 0.0 }
 0x401   :  { %915 = vpow2.f32 %v513_v52 }
 0x407   :  { %v1093_v42 = vpop.f32.mrf.mxu3  ;;  %v1107_v58 = vpop.eup %915 }
 0x408   :  { %v350_v43 = vsel %vm196_vm9, %v1093_v42, -inf  ;;  %v517_v59 = vsel %vm196_vm9, %v1107_v58, 0.0 }
 0x409   :  { %351 = vmax.xlane.f32.xlu1 %v350_v43 }
 0x40f   :  { %v502_v49 = vpop.f32.mrf.mxu3 }
 0x410   :  { %v508_v50 = vsel %vm196_vm9, %v502_v49, -inf }
 0x411   :  { %509 = vmax.xlane.f32.xlu2 %v508_v50  ;;  %662 = vmax.xlane.f32.xlu1 %v661_v51 }
 0x417   :  { %v658_v15 = vpop.f32.mrf.mxu3 }
 0x418   :  { %v664_v21 = vsel %vm196_vm9, %v658_v15, -inf }
 0x419   :  { %210 = vadd.xlane.f32.xlu2 %v209_v55  ;;  %360 = vadd.xlane.f32.xlu1 %v359_v56 }
 0x421   :  { %518 = vadd.xlane.f32.xlu2 %v517_v59 }
 0x439   :  { %896 = vrot.lane.b32.xlu2 %v895_v60, %s969_s15 }
 0x441   :  { %709 = vrot.lane.b32.xlu2 %v1047_v57, %s972_s18 }
 0x47c   :  { %v352_v61 = vpop.xlane.xlu1 %351 }
 0x47d   :  { %v354_v40 = vsub.f32 %v1093_v42, %v352_v61 }
 0x47f   :  { %v357_v41 = vmul.f32 1.442695, %v354_v40 }
 0x484   :  { %v663_v63 = vpop.xlane.xlu1 %662  ;;  %v510_v0 = vpop.xlane.xlu2 %509 }
 0x485   :  { %v667_v1 = vsub.f32 %v630_v47, %v663_v63  ;;  %v512_v2 = vsub.f32 %v502_v49, %v510_v0 }
 0x487   :  { %v669_v3 = vmul.f32 1.442695, %v667_v1  ;;  %v515_v4 = vmul.f32 1.442695, %v512_v2 }
 0x489   :  { %917 = vpow2.f32 %v669_v3 }
 0x48a   :  { %919 = vpow2.f32 %v515_v4 }
 0x48c   :  { %v361_v5 = vpop.xlane.xlu1 %360  ;;  %v211_v6 = vpop.xlane.xlu2 %210 }
 0x48d   :  { %921 = vrcp.f32 %v361_v5  ;;  %v224_v19 = vand.u32 2147483647, %v211_v6  ;;  %v226_v20 = vand.u32 2147483648, %v211_v6  ;;  %vm220_vm15 = vweird.f32 %v211_v6 }
 0x48e   :  { %923 = vrcp.f32 %v211_v6  ;;  %v376_v31 = vand.u32 2147483648, %v361_v5  ;;  %vm370_vm4 = vweird.f32 %v361_v5  ;;  %v374_v33 = vand.u32 2147483647, %v361_v5 }
 0x48f   :  { %v1116_v7 = vpop.eup %917  ;;  %vm225_vm3 = vcmp.eq.f32.partialorder %v224_v19, 8.507059e+37  ;;  %v227_v25 = vor.u32 1.1754944e-38, %v226_v20  ;;  %925 = vpow2.f32 %v357_v41 }
 0x490   :  { %v1118_v8 = vpop.eup %919  ;;  %v673_v9 = vsel %vm196_vm9, %v1116_v7, 0.0  ;;  %v377_v36 = vor.u32 1.1754944e-38, %v376_v31  ;;  %vm375_vm6 = vcmp.eq.f32.partialorder %v374_v33, 8.507059e+37 }
 0x491   :  { %674 = vadd.xlane.f32.xlu0 %v673_v9  ;;  %v520_v10 = vsel %vm196_vm9, %v1118_v8, 0.0 }
 0x492   :  { %521 = vadd.xlane.f32.xlu1 %v520_v10 }
 0x493   :  { %v922_v11 = vpop.eup %921 }
 0x494   :  { %v924_v12 = vpop.eup %923  ;;  %v366_v13 = vmul.f32 %v922_v11, %v361_v5  ;;  %v1124_v14 = vpop.xlane.xlu2 %518  ;;  %vm371_vm1 = vweird.f32 %v922_v11 }
 0x495   :  { %v216_v16 = vmul.f32 %v924_v12, %v211_v6  ;;  %vm221_vm14 = vweird.f32 %v924_v12  ;;  %vm372_vm5 = vmor %vm370_vm4, %vm371_vm1  ;;  %v1135_v43 = vpop.eup %925  ;;  %927 = vrcp.f32 %v1124_v14  ;;  %v534_v55 = vand.u32 2147483648, %v1124_v14 }
 0x496   :  { %v367_v17 = vsub.f32 1.0, %v366_v13  ;;  %vm222_vm2 = vmor %vm220_vm15, %vm221_vm14  ;;  %v362_v44 = vsel %vm196_vm9, %v1135_v43, 0.0  ;;  %vm528_vm10 = vweird.f32 %v1124_v14  ;;  %v532_v59 = vand.u32 2147483647, %v1124_v14 }
 0x497   :  { %v217_v18 = vsub.f32 1.0, %v216_v16  ;;  %v535_v0 = vor.u32 1.1754944e-38, %v534_v55 }
 0x498   :  { %v368_v22 = vmul.f32 %v922_v11, %v367_v17  ;;  %vm533_vm12 = vcmp.eq.f32.partialorder %v532_v59, 8.507059e+37  ;;  %v795_v59 = vld [vmem:[%s1215_s3 + $0x18] sm:$0xff] }
 0x499   :  { %v218_v23 = vmul.f32 %v924_v12, %v217_v18  ;;  %665 = vmax.xlane.f32.xlu0 %v664_v21 }
 0x49a   :  { %v369_v27 = vadd.f32 %v922_v11, %v368_v22 }
 0x49b   :  { %v219_v24 = vadd.f32 %v924_v12, %v218_v23  ;;  %v928_v46 = vpop.eup %927 }
 0x49c   :  { %v897_v26 = vpop.permute.xlu2 %896  ;;  %v373_v35 = vsel %vm372_vm5, %v922_v11, %v369_v27  ;;  %vm529_vm7 = vweird.f32 %v928_v46 }
 0x49d   :  { %v898_v28 = vunpack.i.l.bf16 %v897_v26  ;;  %v899_v29 = vunpack.i.h.bf16 %v897_v26  ;;  %v223_v30 = vsel %vm222_vm2, %v924_v12, %v219_v24  ;;  %v378_v38 = vsel %vm375_vm6, %v377_v36, %v373_v35  ;;  %vm530_vm11 = vmor %vm528_vm10, %vm529_vm7 }
 0x49e   :  { %v228_v32 = vsel %vm225_vm3, %v227_v25, %v223_v30  ;;  %v379_v39 = vmul.f32 %v1101_v54, %v378_v38 }
 0x49f   :  { %417 = vmatpush.msra.mxu0 %v898_v28  ;;  %444 = vmatpush.msrb.mxu1 %v899_v29  ;;  %v229_v34 = vmul.f32 %v1099_v53, %v228_v32 }
 0x4a1   :  { %862 = vmatmul.msk.f32.vlgmr.msrb.gmra.mxu0 %vm196_vm9, %v229_v34 }
 0x4a4   :  { %v710_v10 = vpop.permute.xlu2 %709 }
 0x4a9   :  { %868 = vmatmul.msk.f32.vlgmr.msra.gmra.mxu0 %vm196_vm9, %v379_v39 }
 0x4ad   :  { %553 = vrot.lane.b32.xlu0 %v1047_v57, %s970_s16  ;;  %v524_v57 = vmul.f32 %v928_v46, %v1124_v14 }
 0x4af   :  { %v525_v42 = vsub.f32 1.0, %v524_v57 }
 0x4b1   :  { %v526_v51 = vmul.f32 %v928_v46, %v525_v42 }
 0x4b3   :  { %v527_v53 = vadd.f32 %v928_v46, %v526_v51 }
 0x4b5   :  { %v531_v61 = vsel %vm530_vm11, %v928_v46, %v527_v53  ;;  %v798_v53 = vld [vmem:[%s1215_s3 + $0x30] sm:$0xff] }
 0x4b6   :  { %v536_v1 = vsel %vm533_vm12, %v535_v0, %v531_v61  ;;  %v793_v61 = vld [vmem:[%s1215_s3 + $0x8] sm:$0xff] }
 0x4b7   :  { %v537_v9 = vmul.f32 %v1107_v58, %v536_v1 }
 0x4d7   :  { %363 = vadd.xlane.f32.xlu0 %v362_v44 }
 0x4eb   :  { %735 = vrot.lane.b32.xlu0 %v1059_v62, %s972_s18 }
 0x504   :  { %v675_v45 = vpop.xlane.xlu0 %674 }
 0x505   :  { %929 = vrcp.f32 %v675_v45  ;;  %v690_v3 = vand.u32 2147483648, %v675_v45  ;;  %vm684_vm14 = vweird.f32 %v675_v45  ;;  %v688_v5 = vand.u32 2147483647, %v675_v45 }
 0x507   :  { %v691_v12 = vor.u32 1.1754944e-38, %v690_v3  ;;  %vm689_vm1 = vcmp.eq.f32.partialorder %v688_v5, 8.507059e+37 }
 0x50b   :  { %v930_v49 = vpop.eup %929 }
 0x50c   :  { %v666_v47 = vpop.xlane.xlu0 %665  ;;  %v680_v52 = vmul.f32 %v930_v49, %v675_v45  ;;  %vm685_vm13 = vweird.f32 %v930_v49 }
 0x50d   :  { %v668_v48 = vsub.f32 %v658_v15, %v666_v47  ;;  %vm686_vm15 = vmor %vm684_vm14, %vm685_vm13 }
 0x50e   :  { %v681_v54 = vsub.f32 1.0, %v680_v52 }
 0x50f   :  { %v671_v50 = vmul.f32 1.442695, %v668_v48 }
 0x510   :  { %v682_v63 = vmul.f32 %v930_v49, %v681_v54  ;;  %v797_v54 = vld [vmem:[%s1215_s3 + $0x28] sm:$0xff] }
 0x511   :  { %931 = vpow2.f32 %v671_v50 }
 0x512   :  { %v683_v2 = vadd.f32 %v930_v49, %v682_v63  ;;  %v792_v63 = vld [vmem:[%s1215_s3] sm:$0xff] }
 0x514   :  { %v687_v11 = vsel %vm686_vm15, %v930_v49, %v683_v2 }
 0x515   :  { %v692_v13 = vsel %vm689_vm1, %v691_v12, %v687_v11  ;;  %vm804_vm1 = vcmask 523264  }
 0x516   :  { %v693_v15 = vmul.f32 %v1116_v7, %v692_v13 }
 0x517   :  { %v1144_v56 = vpop.eup %931 }
 0x518   :  { %v676_v60 = vsel %vm196_vm9, %v1144_v56, 0.0 }
 0x519   :  { %677 = vadd.xlane.f32.xlu1 %v676_v60  ;;  %v794_v60 = vld [vmem:[%s1215_s3 + $0x10] sm:$0xff] }
 0x51e   :  { %v1150_v4 = vpop.f32.mrf.mxu0 }
 0x51f   :  { %v554_v6 = vpop.permute.xlu0 %553 }
 0x520   :  { %574 = vmatpush.msrb.mxu0 %v554_v6 }
 0x521   :  { %874 = vmatmul.msk.f32.vlgmr.msrb.gmra.mxu0 %vm196_vm9, %v537_v9 }
 0x522   :  { %730 = vmatpush.msra.mxu0 %v710_v10 }
 0x526   :  { %v419_v14 = vpop.f32.mrf.mxu0 }
 0x527   :  { %763 = vrot.lane.b32.xlu2 %v419_v14, %s971_s17 }
 0x529   :  { %880 = vmatmul.msk.f32.vlgmr.msra.gmra.mxu0 %vm196_vm9, %v693_v15 }
 0x532   :  { %579 = vrot.lane.b32.xlu1 %v1059_v62, %s970_s16  ;;  %v522_v62 = vpop.xlane.xlu1 %521 }
 0x533   :  { %v549_v35 = vand.u32 2147483648, %v522_v62  ;;  %vm543_vm7 = vweird.f32 %v522_v62  ;;  %v547_v36 = vand.u32 2147483647, %v522_v62 }
 0x535   :  { %v550_v41 = vor.u32 1.1754944e-38, %v549_v35  ;;  %vm548_vm11 = vcmp.eq.f32.partialorder %v547_v36, 8.507059e+37 }
 0x54a   :  { %v364_v58 = vpop.xlane.xlu0 %363 }
 0x54b   :  { %933 = vrcp.f32 %v364_v58  ;;  %v391_v19 = vand.u32 2147483648, %v364_v58  ;;  %v389_v21 = vand.u32 2147483647, %v364_v58  ;;  %vm385_vm3 = vweird.f32 %v364_v58 }
 0x54c   :  { %935 = vrcp.f32 %v522_v62 }
 0x54d   :  { %v392_v23 = vor.u32 1.1754944e-38, %v391_v19  ;;  %vm390_vm5 = vcmp.eq.f32.partialorder %v389_v21, 8.507059e+37 }
 0x551   :  { %v934_v16 = vpop.eup %933 }
 0x552   :  { %v381_v17 = vmul.f32 %v934_v16, %v364_v58  ;;  %vm386_vm2 = vweird.f32 %v934_v16  ;;  %v936_v26 = vpop.eup %935 }
 0x553   :  { %vm387_vm4 = vmor %vm385_vm3, %vm386_vm2  ;;  %v539_v28 = vmul.f32 %v936_v26, %v522_v62  ;;  %vm544_vm6 = vweird.f32 %v936_v26 }
 0x554   :  { %v382_v18 = vsub.f32 1.0, %v381_v17  ;;  %vm545_vm10 = vmor %vm543_vm7, %vm544_vm6 }
 0x555   :  { %v540_v29 = vsub.f32 1.0, %v539_v28 }
 0x556   :  { %v383_v20 = vmul.f32 %v934_v16, %v382_v18 }
 0x557   :  { %v541_v31 = vmul.f32 %v936_v26, %v540_v29 }
 0x558   :  { %v384_v22 = vadd.f32 %v934_v16, %v383_v20 }
 0x559   :  { %v542_v33 = vadd.f32 %v936_v26, %v541_v31 }
 0x55a   :  { %v388_v7 = vsel %vm387_vm4, %v934_v16, %v384_v22 }
 0x55b   :  { %v393_v24 = vsel %vm390_vm5, %v392_v23, %v388_v7  ;;  %v546_v38 = vsel %vm545_vm10, %v936_v26, %v542_v33 }
 0x55c   :  { %v394_v25 = vmul.f32 %v1135_v43, %v393_v24  ;;  %v551_v43 = vsel %vm548_vm11, %v550_v41, %v546_v38 }
 0x55d   :  { %v552_v47 = vmul.f32 %v1118_v8, %v551_v43  ;;  %v736_v42 = vpop.permute.xlu0 %735  ;;  %v799_v8 = vld [vmem:[%s1215_s3 + $0x38] sm:$0xff] }
 0x55e   :  { %869 = vmatmul.msk.f32.vlgmr.msrb.gmra.mxu1 %vm196_vm9, %v394_v25  ;;  %819 = vmatpush.msrb.mxu2 %v799_v8 }
 0x560   :  { %820 = vmatpush.msrb.mxu2 %v798_v53 }
 0x562   :  { %821 = vmatpush.msrb.mxu2 %v797_v54 }
 0x581   :  { %v764_v0 = vpop.permute.xlu2 %763 }
 0x582   :  { %v785_v2 = vsel %vm144_vm8, %v1150_v4, %v764_v0  ;;  %v900_v4 = vld [vmem:[%s1216_s4] ss:$0 sm:$0xff]  ;;  %s842_s4 = sshll.u32 %s1217_s5, 4  ;;  %s843_s4 = int_to_ptr.hbm [resolvable:$true] %s842_s4 }
 0x58c   :  { %v678_v27 = vpop.xlane.xlu1 %677 }
 0x58d   :  { %937 = vrcp.f32 %v678_v27  ;;  %v705_v45 = vand.u32 2147483648, %v678_v27  ;;  %vm699_vm13 = vweird.f32 %v678_v27  ;;  %v703_v46 = vand.u32 2147483647, %v678_v27 }
 0x58f   :  { %v706_v50 = vor.u32 1.1754944e-38, %v705_v45  ;;  %vm704_vm15 = vcmp.eq.f32.partialorder %v703_v46, 8.507059e+37 }
 0x593   :  { %v938_v30 = vpop.eup %937 }
 0x594   :  { %v695_v32 = vmul.f32 %v938_v30, %v678_v27  ;;  %vm700_vm12 = vweird.f32 %v938_v30 }
 0x595   :  { %vm701_vm14 = vmor %vm699_vm13, %vm700_vm12 }
 0x596   :  { %v696_v34 = vsub.f32 1.0, %v695_v32 }
 0x598   :  { %v697_v39 = vmul.f32 %v938_v30, %v696_v34 }
 0x59a   :  { %v698_v44 = vadd.f32 %v938_v30, %v697_v39 }
 0x59c   :  { %v702_v48 = vsel %vm701_vm14, %v938_v30, %v698_v44 }
 0x59d   :  { %v707_v51 = vsel %vm704_vm15, %v706_v50, %v702_v48 }
 0x59e   :  { %v576_v40 = vpop.f32.mrf.mxu0  ;;  %v708_v52 = vmul.f32 %v1144_v56, %v707_v51  ;;  %v796_v56 = vld [vmem:[%s1215_s3 + $0x20] sm:$0xff] }
 0x59f   :  { %771 = vrot.lane.b32.xlu0 %v576_v40, %s968_s2  ;;  %822 = vmatpush.msrb.mxu2 %v796_v56 }
 0x5a1   :  { %823 = vmatpush.msrb.mxu2 %v795_v59 }
 0x5a3   :  { %824 = vmatpush.msrb.mxu2 %v794_v60 }
 0x5a4   :  { %v580_v57 = vpop.permute.xlu1 %579 }
 0x5a5   :  { %600 = vmatpush.msra.mxu1 %v580_v57  ;;  %825 = vmatpush.msrb.mxu2 %v793_v61 }
 0x5a6   :  { %875 = vmatmul.msk.f32.vlgmr.msra.gmra.mxu1 %vm196_vm9, %v552_v47  ;;  %v732_v49 = vpop.f32.mrf.mxu0 }
 0x5a7   :  { %756 = vmatpush.msrb.mxu1 %v736_v42  ;;  %779 = vrot.lane.b32.xlu1 %v732_v49, %s967_s14 }
 0x5a8   :  { %826 = vmatpush.msrb.mxu2 %v792_v63 }
 0x5ae   :  { %881 = vmatmul.msk.f32.vlgmr.msrb.gmra.mxu1 %vm196_vm9, %v708_v52  ;;  %vm789_vm9 = vcmask 392192  }
 0x5db   :  { %v446_v55 = vpop.f32.mrf.mxu1 }
 0x5dc   :  { %765 = vrot.lane.b32.xlu2 %v446_v55, %s971_s17 }
 0x611   :  { %v772_v1 = vpop.permute.xlu0 %771 }
 0x612   :  { %v787_v3 = vsel %vm23_vm0, %v785_v2, %v772_v1 }
 0x619   :  { %v780_v5 = vpop.permute.xlu1 %779 }
 0x61a   :  { %v790_v6 = vsel %vm789_vm9, %v787_v3, %v780_v5 }
 0x61b   :  { %882 = vmatmul.msk.f32.vlgmr.msrb.gmra.mxu2 %vm804_vm1, %v790_v6 }
 0x623   :  { %v602_v9 = vpop.f32.mrf.mxu1 }
 0x624   :  { %773 = vrot.lane.b32.xlu0 %v602_v9, %s968_s2 }
 0x62b   :  { %v758_v10 = vpop.f32.mrf.mxu1 }
 0x62c   :  { %781 = vrot.lane.b32.xlu1 %v758_v10, %s967_s14  ;;  %s975_s14 = smov 8  }
 0x636   :  { %v766_v11 = vpop.permute.xlu2 %765 }
 0x637   :  { %v786_v13 = vsel %vm144_vm8, %v1090_v37, %v766_v11 }
 0x696   :  { %v774_v12 = vpop.permute.xlu0 %773 }
 0x697   :  { %v788_v14 = vsel %vm23_vm0, %v786_v13, %v774_v12 }
 0x69e   :  { %v828_v15 = vpop.f32.mrf.mxu2  ;;  %v782_v58 = vpop.permute.xlu1 %781 }
 0x69f   :  { %v829_v16 = vadd.f32 %v900_v4, %v828_v15  ;;  %v791_v17 = vsel %vm789_vm9, %v788_v14, %v782_v58 }
 0x6a0   :  { %883 = vmatmul.msk.f32.gmra.mxu2 %vm804_vm1, %v791_v17 }
 0x6a1   :  { %834 = vst.msk [vmem:[#allocation2] sm:$0xff] %vm23_vm0, %v829_v16 }
 0x723   :  { %v831_v18 = vpop.f32.mrf.mxu2 }
 0x724   :  { %v832_v37 = vadd.f32 %v900_v4, %v831_v18 }
 0x726   :  { %835 = vst.msk [vmem:[#allocation2 + $0x8] sm:$0xff] %vm23_vm0, %v832_v37 }
 0x727   :  { %848 = dma.vmem_to_hbm [thread:$0]  %s841_s11, 256, %s843_s4, [#allocation3], %s974_s13, %s974_s13, %s975_s14  }
 0x728   :  { %963 = dma.done.wait [#allocation3], 256  }
 0x729   :  { %964 = vsyncadd [#allocation3], 4294967040 }
 0x72a   :  { %853 = vsyncpa [#allocation3], 1 }

</bundles_post_ra>
